<compile_context>
chip_gen: v5e
topology: v5e:2x2
jax: 0.10.0
libtpu: 0.0.40
codegen_flags: <defaults>
</compile_context>

<pallas_src>
import functools

import jax
import jax.numpy as jnp
from jax.experimental import pallas as pl
from jax.experimental.pallas import tpu as pltpu


# ------------------------------ helpers -------------------------------------

def _round_up(n, m):
    return (n + m - 1) // m * m


# Conservative scoped-VMEM budget that fits every generation
# (v5e/v6e physical 128 MiB, v7x physical 64 MiB per TensorCore).
_VMEM_BUDGET_BYTES = 40 * 1024 * 1024
_VMEM_LIMIT_BYTES = 48 * 1024 * 1024
_MAX_ROW_TILE = 512  # multiple of 128 -> good MXU M-dim on v5e/v6e/v7x


def _pick_row_tile(rows, d_in_p, d_out_p, itemsize, max_tile=_MAX_ROW_TILE):
    """Largest row tile (multiple of 8, <= max_tile) that fits the VMEM budget.

    BlockSpec double-buffers each row-tiled input/output; the weight / params
    have a constant index_map so they stay resident (counted once, x2 margin).
    """
    fixed = 2 * (d_in_p * d_out_p + 2 * d_in_p + d_out_p) * itemsize
    per_row = 2 * (d_in_p + d_out_p) * itemsize          # x tile + out tile, 2-deep
    avail = max(_VMEM_BUDGET_BYTES - fixed, 8 * per_row)
    tm = min(max_tile, max(8, (avail // per_row) // 8 * 8))
    tm = min(tm, _round_up(rows, 8))
    return int(tm)


# ----------------------- fused LayerNorm + Linear kernel ---------------------

def _prenorm_linear_kernel(x_ref, g_ref, b_ref, w_ref, bias_ref, o_ref,
                           *, eps, inv_d):
    x = x_ref[...].astype(jnp.float32)                       # (tm, Dp)
    # One-pass stats over the true feature width (padded lanes are zero, so
    # they do not perturb the sums; divide by the true D via inv_d).
    s = jnp.sum(x, axis=-1, keepdims=True)
    ssq = jnp.sum(x * x, axis=-1, keepdims=True)
    mean = s * inv_d
    var = jnp.maximum(ssq * inv_d - mean * mean, 0.0)        # clamp cancellation
    inv = jax.lax.rsqrt(var + eps)
    y = (x - mean) * inv
    # gamma/beta are zero beyond the true D, so padded lanes of y become
    # exactly 0 and contribute nothing to the matmul.
    y = y * g_ref[...].astype(jnp.float32) + b_ref[...].astype(jnp.float32)
    acc = jnp.dot(y.astype(w_ref.dtype), w_ref[...],
                  preferred_element_type=jnp.float32)        # (tm, Dout_p)
    acc = acc + bias_ref[...].astype(jnp.float32)
    o_ref[...] = acc.astype(o_ref.dtype)


def prenorm_fused_linear(x, gamma, beta, w, bias, *, eps=1e-5):
    """fn(LayerNorm(x)) with fn = Linear(w, bias), fused into one kernel."""
    orig_shape = x.shape
    d_in = orig_shape[-1]
    d_out = w.shape[1]
    x2 = x.reshape(-1, d_in)
    rows = x2.shape[0]

    # Lane-dense feature dims (multiples of 128).
    d_in_p = _round_up(d_in, 128)
    d_out_p = _round_up(d_out, 128)

    itemsize = jnp.dtype(x.dtype).itemsize
    tm = _pick_row_tile(rows, d_in_p, d_out_p, itemsize)
    rows_p = _round_up(rows, tm)

    x_p = jnp.pad(x2, ((0, rows_p - rows), (0, d_in_p - d_in)))
    g_p = jnp.pad(gamma.reshape(1, d_in), ((0, 0), (0, d_in_p - d_in)))
    b_p = jnp.pad(beta.reshape(1, d_in), ((0, 0), (0, d_in_p - d_in)))
    w_p = jnp.pad(w, ((0, d_in_p - d_in), (0, d_out_p - d_out)))
    bias_p = jnp.pad(bias.reshape(1, d_out), ((0, 0), (0, d_out_p - d_out)))

    out = pl.pallas_call(
        functools.partial(_prenorm_linear_kernel, eps=eps, inv_d=1.0 / d_in),
        out_shape=jax.ShapeDtypeStruct((rows_p, d_out_p), x.dtype),
        grid_spec=pltpu.PrefetchScalarGridSpec(
            num_scalar_prefetch=0,
            grid=(rows_p // tm,),
            in_specs=[
                pl.BlockSpec((tm, d_in_p), lambda i: (i, 0)),       # x (tiled)
                pl.BlockSpec((1, d_in_p), lambda i: (0, 0)),        # gamma (resident)
                pl.BlockSpec((1, d_in_p), lambda i: (0, 0)),        # beta  (resident)
                pl.BlockSpec((d_in_p, d_out_p), lambda i: (0, 0)),  # W     (resident)
                pl.BlockSpec((1, d_out_p), lambda i: (0, 0)),       # bias  (resident)
            ],
            out_specs=pl.BlockSpec((tm, d_out_p), lambda i: (i, 0)),
        ),
        compiler_params=pltpu.CompilerParams(
            dimension_semantics=("parallel",),           # shard rows across TCs (v7x)
            vmem_limit_bytes=_VMEM_LIMIT_BYTES,
        ),
    )(x_p, g_p, b_p, w_p, bias_p)

    out = out[:rows, :d_out]
    return out.reshape(*orig_shape[:-1], d_out)


# -------------------- standalone LayerNorm (generic fn path) -----------------

def _layernorm_kernel(x_ref, g_ref, b_ref, o_ref, *, eps, inv_d):
    x = x_ref[...].astype(jnp.float32)                        # (tm, Dp)
    s = jnp.sum(x, axis=-1, keepdims=True)
    ssq = jnp.sum(x * x, axis=-1, keepdims=True)
    mean = s * inv_d
    var = jnp.maximum(ssq * inv_d - mean * mean, 0.0)
    inv = jax.lax.rsqrt(var + eps)
    y = (x - mean) * inv
    y = y * g_ref[...].astype(jnp.float32) + b_ref[...].astype(jnp.float32)
    o_ref[...] = y.astype(o_ref.dtype)


def layernorm(x, gamma, beta, *, eps=1e-5):
    """LayerNorm over the last axis of x (any leading dims)."""
    orig_shape = x.shape
    d = orig_shape[-1]
    x2 = x.reshape(-1, d)
    rows = x2.shape[0]

    d_p = _round_up(d, 128)
    itemsize = jnp.dtype(x.dtype).itemsize
    tm = _pick_row_tile(rows, d_p, d_p, itemsize)
    rows_p = _round_up(rows, tm)

    x_p = jnp.pad(x2, ((0, rows_p - rows), (0, d_p - d)))
    g_p = jnp.pad(gamma.reshape(1, d), ((0, 0), (0, d_p - d)))
    b_p = jnp.pad(beta.reshape(1, d), ((0, 0), (0, d_p - d)))

    out = pl.pallas_call(
        functools.partial(_layernorm_kernel, eps=eps, inv_d=1.0 / d),
        out_shape=jax.ShapeDtypeStruct((rows_p, d_p), x.dtype),
        grid_spec=pltpu.PrefetchScalarGridSpec(
            num_scalar_prefetch=0,
            grid=(rows_p // tm,),
            in_specs=[
                pl.BlockSpec((tm, d_p), lambda i: (i, 0)),
                pl.BlockSpec((1, d_p), lambda i: (0, 0)),
                pl.BlockSpec((1, d_p), lambda i: (0, 0)),
            ],
            out_specs=pl.BlockSpec((tm, d_p), lambda i: (i, 0)),
        ),
        compiler_params=pltpu.CompilerParams(
            dimension_semantics=("parallel",),
            vmem_limit_bytes=_VMEM_LIMIT_BYTES,
        ),
    )(x_p, g_p, b_p)

    return out[:rows, :d].reshape(orig_shape)


# --------------------------------- PreNorm ----------------------------------

def prenorm(x, gamma, beta, fn, *args, **kwargs):
    """Generic PreNorm.forward: fn(LayerNorm(x), *args, **kwargs).

    Use `prenorm_fused_linear` when `fn` begins with a dense projection — it
    fuses the LayerNorm and the matmul into one Pallas kernel.
    """
    return fn(layernorm(x, gamma, beta), *args, **kwargs)


# ----------------------------------- main ------------------------------------

if __name__ == "__main__":
    B, N, D = 2, 8, 32        # batch, tokens, embed dim

    key = jax.random.PRNGKey(0)
    kx, kg, kb, kw, kbias = jax.random.split(key, 5)

    x = jax.random.normal(kx, (B, N, D), dtype=jnp.float32)

    # LayerNorm params (perturbed so the affine path is exercised).
    gamma = 1.0 + 0.1 * jax.random.normal(kg, (D,), dtype=jnp.float32)
    beta = 0.1 * jax.random.normal(kb, (D,), dtype=jnp.float32)

    # `fn` = Linear(D -> D).
    w = jax.random.normal(kw, (D, D), dtype=jnp.float32) / jnp.sqrt(D)
    bias = 0.05 * jax.random.normal(kbias, (D,), dtype=jnp.float32)

    # Fused PreNorm + Linear (single pallas_call — the hot path).
    out = prenorm_fused_linear(x, gamma, beta, w, bias)
    out = jax.block_until_ready(out)

    # Generic PreNorm path (Pallas LayerNorm, arbitrary fn).
    out_generic = prenorm(x, gamma, beta, lambda y: y @ w + bias)
    out_generic = jax.block_until_ready(out_generic)

    # Reference in plain JAX (LayerNorm + Linear).
    mean = jnp.mean(x, axis=-1, keepdims=True)
    var = jnp.mean((x - mean) ** 2, axis=-1, keepdims=True)
    ref = (x - mean) / jnp.sqrt(var + 1e-5) * gamma + beta
    ref = ref @ w + bias

    assert out.shape == (B, N, D)
    assert jnp.allclose(out, ref, atol=1e-4, rtol=1e-4), "fused mismatch vs reference"
    assert jnp.allclose(out_generic, ref, atol=1e-4, rtol=1e-4), "generic mismatch vs reference"

    print("KERNEL_OK")
</pallas_src>

<mosaic_0001>
module attributes {stable_mosaic.version = 11 : i64} {
  func.func @_prenorm_linear_kernel(%arg0: i32, %arg1: memref<16x128xf32, #tpu.memory_space<vmem>>, %arg2: memref<1x128xf32, #tpu.memory_space<vmem>>, %arg3: memref<1x128xf32, #tpu.memory_space<vmem>>, %arg4: memref<128x128xf32, #tpu.memory_space<vmem>>, %arg5: memref<1x128xf32, #tpu.memory_space<vmem>>, %arg6: memref<16x128xf32, #tpu.memory_space<vmem>>) attributes {dimension_semantics = [#tpu.dimension_semantics<parallel>], iteration_bounds = array<i64: 1>, scalar_prefetch = 0 : i64, scratch_operands = 0 : i64, tpu.core_type = #tpu.core_type<tc>, window_params = [{transform_indices = @transform_0, window_bounds = array<i64: 16, 128>}, {pipeline_mode = #tpu.pipeline_mode<synchronous>, transform_indices = @transform_1, window_bounds = array<i64: 1, 128>}, {pipeline_mode = #tpu.pipeline_mode<synchronous>, transform_indices = @transform_2, window_bounds = array<i64: 1, 128>}, {pipeline_mode = #tpu.pipeline_mode<synchronous>, transform_indices = @transform_3, window_bounds = array<i64: 128, 128>}, {pipeline_mode = #tpu.pipeline_mode<synchronous>, transform_indices = @transform_4, window_bounds = array<i64: 1, 128>}, {transform_indices = @transform_5, window_bounds = array<i64: 16, 128>}]} {
    %c0 = arith.constant 0 : index
    %c0_0 = arith.constant 0 : index
    %0 = vector.load %arg1[%c0, %c0_0] : memref<16x128xf32, #tpu.memory_space<vmem>>, vector<16x128xf32>
    %cst = arith.constant dense<0.000000e+00> : vector<16xf32>
    %1 = vector.multi_reduction <add>, %0, %cst [1] : vector<16x128xf32> to vector<16xf32>
    %2 = vector.shape_cast %1 : vector<16xf32> to vector<16x1xf32>
    %3 = arith.mulf %0, %0 : vector<16x128xf32>
    %cst_1 = arith.constant dense<0.000000e+00> : vector<16xf32>
    %4 = vector.multi_reduction <add>, %3, %cst_1 [1] : vector<16x128xf32> to vector<16xf32>
    %5 = vector.shape_cast %4 : vector<16xf32> to vector<16x1xf32>
    %cst_2 = arith.constant 3.125000e-02 : f32
    %6 = vector.broadcast %cst_2 : f32 to vector<16x1xf32>
    %7 = arith.mulf %2, %6 : vector<16x1xf32>
    %cst_3 = arith.constant 3.125000e-02 : f32
    %8 = vector.broadcast %cst_3 : f32 to vector<16x1xf32>
    %9 = arith.mulf %5, %8 : vector<16x1xf32>
    %10 = arith.mulf %7, %7 : vector<16x1xf32>
    %11 = arith.subf %9, %10 : vector<16x1xf32>
    %cst_4 = arith.constant 0.000000e+00 : f32
    %12 = vector.broadcast %cst_4 : f32 to vector<16x1xf32>
    %13 = arith.maximumf %11, %12 : vector<16x1xf32>
    %cst_5 = arith.constant 9.99999974E-6 : f32
    %14 = vector.broadcast %cst_5 : f32 to vector<16x1xf32>
    %15 = arith.addf %13, %14 : vector<16x1xf32>
    %16 = math.rsqrt %15 : vector<16x1xf32>
    %17 = vector.broadcast %7 : vector<16x1xf32> to vector<16x128xf32>
    %18 = arith.subf %0, %17 : vector<16x128xf32>
    %19 = vector.broadcast %16 : vector<16x1xf32> to vector<16x128xf32>
    %20 = arith.mulf %18, %19 : vector<16x128xf32>
    %c0_6 = arith.constant 0 : index
    %c0_7 = arith.constant 0 : index
    %21 = vector.load %arg2[%c0_6, %c0_7] : memref<1x128xf32, #tpu.memory_space<vmem>>, vector<1x128xf32>
    %22 = vector.broadcast %21 : vector<1x128xf32> to vector<16x128xf32>
    %23 = arith.mulf %20, %22 : vector<16x128xf32>
    %c0_8 = arith.constant 0 : index
    %c0_9 = arith.constant 0 : index
    %24 = vector.load %arg3[%c0_8, %c0_9] : memref<1x128xf32, #tpu.memory_space<vmem>>, vector<1x128xf32>
    %25 = vector.broadcast %24 : vector<1x128xf32> to vector<16x128xf32>
    %26 = arith.addf %23, %25 : vector<16x128xf32>
    %c0_10 = arith.constant 0 : index
    %c0_11 = arith.constant 0 : index
    %27 = vector.load %arg4[%c0_10, %c0_11] : memref<128x128xf32, #tpu.memory_space<vmem>>, vector<128x128xf32>
    %cst_12 = arith.constant dense<0.000000e+00> : vector<16x128xf32>
    %28 = tpu.matmul %26, %27, %cst_12 {dimension_numbers = #tpu.dot_dimension_numbers<[1], [0], [0], [1], [0, 0, 1, 1], [], []>} : vector<16x128xf32>, vector<128x128xf32>, vector<16x128xf32> -> vector<16x128xf32>
    %c0_13 = arith.constant 0 : index
    %c0_14 = arith.constant 0 : index
    %29 = vector.load %arg5[%c0_13, %c0_14] : memref<1x128xf32, #tpu.memory_space<vmem>>, vector<1x128xf32>
    %30 = vector.broadcast %29 : vector<1x128xf32> to vector<16x128xf32>
    %31 = arith.addf %28, %30 : vector<16x128xf32>
    %c0_15 = arith.constant 0 : index
    %c0_16 = arith.constant 0 : index
    %32 = vector.load %arg6[%c0_15, %c0_16] : memref<16x128xf32, #tpu.memory_space<vmem>>, vector<16x128xf32>
    tpu.vector_store %arg6[%c0_15, %c0_16], %31 {strides = array<i32>} : memref<16x128xf32, #tpu.memory_space<vmem>>, vector<16x128xf32>,
    return
  }
  func.func @transform_0(%arg0: i32) -> (i32, i32) {
    %c0_i32 = arith.constant 0 : i32
    %c0_i32_0 = arith.constant 0 : i32
    return %arg0, %c0_i32 : i32, i32
  }
  func.func @transform_1(%arg0: i32) -> (i32, i32) {
    %c0_i32 = arith.constant 0 : i32
    %c0_i32_0 = arith.constant 0 : i32
    %c0_i32_1 = arith.constant 0 : i32
    return %c0_i32, %c0_i32_0 : i32, i32
  }
  func.func @transform_2(%arg0: i32) -> (i32, i32) {
    %c0_i32 = arith.constant 0 : i32
    %c0_i32_0 = arith.constant 0 : i32
    %c0_i32_1 = arith.constant 0 : i32
    return %c0_i32, %c0_i32_0 : i32, i32
  }
  func.func @transform_3(%arg0: i32) -> (i32, i32) {
    %c0_i32 = arith.constant 0 : i32
    %c0_i32_0 = arith.constant 0 : i32
    %c0_i32_1 = arith.constant 0 : i32
    return %c0_i32, %c0_i32_0 : i32, i32
  }
  func.func @transform_4(%arg0: i32) -> (i32, i32) {
    %c0_i32 = arith.constant 0 : i32
    %c0_i32_0 = arith.constant 0 : i32
    %c0_i32_1 = arith.constant 0 : i32
    return %c0_i32, %c0_i32_0 : i32, i32
  }
  func.func @transform_5(%arg0: i32) -> (i32, i32) {
    %c0_i32 = arith.constant 0 : i32
    %c0_i32_0 = arith.constant 0 : i32
    return %arg0, %c0_i32 : i32, i32
  }
}

</mosaic_0001>

<bundles_post_ra>
// kernel: tpu_custom_call.1
= control target key start
LH: loop header
LB: loop body
LE: loop exit
PB: predicated region body
PF: predicated region fallthrough
CT: control target
= control target key end

     0   :  { %10 = vsyncpa [#allocation3], 0  ;;  %s397_s0 = inlined_call_operand.hbm [shape: f32[16,128], index: 0, kind: input, shape index: {}]   ;;  %s398_s1 = inlined_call_operand.hbm [shape: f32[1,128], index: 1, kind: input, shape index: {}]   ;;  %s399_s2 = inlined_call_operand.vmem [shape: f32[1,128], index: 2, kind: input, shape index: {}]   ;;  %s400_s3 = inlined_call_operand.hbm [shape: f32[128,128], index: 3, kind: input, shape index: {}]   ;;  %s401_s4 = inlined_call_operand.vmem [shape: f32[1,128], index: 4, kind: input, shape index: {}]   ;;  %s402_s5 = inlined_call_operand.hbm [shape: f32[16,128], index: 5, kind: output, shape index: {}]  }
   0x1   :  { %11 = vsyncpa [#allocation6], 0  ;;  %s31_s20 = sshll.u32 %s398_s1, 4  ;;  %s32_s20 = int_to_ptr.hbm [resolvable:$true] %s31_s20 }
   0x2   :  { %12 = vsyncpa [#allocation4], 0  ;;  %s322_s21 = smov [#allocation5]   ;;  %s17_s25 = sshll.u32 %s397_s0, 4  ;;  %s18_s25 = int_to_ptr.hbm [resolvable:$true] %s17_s25 }
   0x3   :  { %s33_s22 = sshll.u32 %s322_s21, 4  ;;  %s323_s26 = smov [#allocation2]   ;;  %s34_s22 = int_to_ptr.vmem [resolvable:$true] %s33_s22 }
   0x4   :  { %36 = dma.hbm_to_vmem [thread:$0]  %s32_s20, 16, %s34_s22, [#allocation6]  }
   0x5   :  { %s19_s27 = sshll.u32 %s323_s26, 4  ;;  %s324_s28 = smov 128   ;;  %s20_s27 = int_to_ptr.vmem [resolvable:$true] %s19_s27 }
   0x6   :  { %s325_s29 = smov 8   ;;  %s43_s6 = sshll.u32 %s400_s3, 4  ;;  %s44_s6 = int_to_ptr.hbm [resolvable:$true] %s43_s6 }
   0x7   :  { %25 = dma.hbm_to_vmem [thread:$0]  %s18_s25, 256, %s20_s27, [#allocation3], %s324_s28, %s324_s28, %s325_s29  }
   0x8   :  { %s326_s7 = smov [#allocation7]  }
   0x9   :  { %s45_s8 = sshll.u32 %s326_s7, 4  ;;  %s46_s8 = int_to_ptr.vmem [resolvable:$true] %s45_s8 }
   0xa   :  { %51 = dma.hbm_to_vmem [thread:$0]  %s44_s6, 2048, %s46_s8, [#allocation6], %s324_s28, %s324_s28, %s325_s29  }
   0xb   :  { %316 = dma.done.wait [#allocation3], 256  }
   0xc   :  { %317 = vsyncadd [#allocation3], 4294967040 }
   0xd   :  { %318 = dma.done.wait [#allocation6], 2064  }
   0xe   :  { %319 = vsyncadd [#allocation6], 4294965232  ;;  %v373_v0 = vld [vmem:[#allocation2] sm:$0xff]  ;;  %v378_v2 = vld [vmem:[#allocation2 + $0x8] sm:$0xff]  ;;  %s177_s14 = sshll.u32 %s402_s5, 4  ;;  %s178_s14 = int_to_ptr.hbm [resolvable:$true] %s177_s14 }
   0xf   :  { %68 = vadd.xlane.f32.xlu0 %v373_v0  ;;  %v72_v1 = vmul.f32 %v373_v0, %v373_v0  ;;  %v73_v3 = vmul.f32 %v378_v2, %v378_v2  ;;  %v141_v4 = vld [vmem:[#allocation7 + $0x78] sm:$0xff]  ;;  %v140_v5 = vld [vmem:[#allocation7 + $0x70] sm:$0xff]  ;;  %v139_v6 = vld [vmem:[#allocation7 + $0x68] sm:$0xff] }
  0x10   :  { %146 = vmatpush.msra.mxu0 %v141_v4  ;;  %191 = vmatpush.msra.mxu1 %v141_v4  ;;  %v138_v7 = vld [vmem:[#allocation7 + $0x60] sm:$0xff]  ;;  %v137_v8 = vld [vmem:[#allocation7 + $0x58] sm:$0xff]  ;;  %v136_v9 = vld [vmem:[#allocation7 + $0x50] sm:$0xff] }
  0x11   :  { %74 = vadd.xlane.f32.xlu1 %v72_v1  ;;  %v135_v10 = vld [vmem:[#allocation7 + $0x48] sm:$0xff]  ;;  %v134_v11 = vld [vmem:[#allocation7 + $0x40] sm:$0xff]  ;;  %v133_v12 = vld [vmem:[#allocation7 + $0x38] sm:$0xff] }
  0x12   :  { %147 = vmatpush.msra.mxu0 %v140_v5  ;;  %192 = vmatpush.msra.mxu1 %v140_v5  ;;  %v132_v13 = vld [vmem:[#allocation7 + $0x30] sm:$0xff]  ;;  %v131_v14 = vld [vmem:[#allocation7 + $0x28] sm:$0xff]  ;;  %v130_v15 = vld [vmem:[#allocation7 + $0x20] sm:$0xff] }
  0x13   :  { %v129_v16 = vld [vmem:[#allocation7 + $0x18] sm:$0xff]  ;;  %v128_v17 = vld [vmem:[#allocation7 + $0x10] sm:$0xff]  ;;  %v127_v19 = vld [vmem:[#allocation7 + $0x8] sm:$0xff] }
  0x14   :  { %148 = vmatpush.msra.mxu0 %v139_v6  ;;  %193 = vmatpush.msra.mxu1 %v139_v6  ;;  %v126_v21 = vld [vmem:[#allocation7] sm:$0xff]  ;;  %v213_v45 = vld [vmem:[#allocation5] ss:$0 sm:$0xff]  ;;  %v214_v49 = vld [vmem:[%s399_s2] ss:$0 sm:$0xff]  ;;  %s327_s2 = smov [#allocation8]  }
  0x15   :  { %v215_v60 = vld [vmem:[%s401_s4] ss:$0 sm:$0xff]  ;;  %s175_s11 = sshll.u32 %s327_s2, 4  ;;  %s176_s11 = int_to_ptr.vmem [resolvable:$true] %s175_s11 }
  0x16   :  { %149 = vmatpush.msra.mxu0 %v138_v7  ;;  %194 = vmatpush.msra.mxu1 %v138_v7 }
  0x17   :  { %70 = vadd.xlane.f32.xlu0 %v378_v2 }
  0x18   :  { %150 = vmatpush.msra.mxu0 %v137_v8  ;;  %195 = vmatpush.msra.mxu1 %v137_v8 }
  0x19   :  { %76 = vadd.xlane.f32.xlu1 %v73_v3 }
  0x1a   :  { %151 = vmatpush.msra.mxu0 %v136_v9  ;;  %196 = vmatpush.msra.mxu1 %v136_v9 }
  0x1c   :  { %152 = vmatpush.msra.mxu0 %v135_v10  ;;  %197 = vmatpush.msra.mxu1 %v135_v10 }
  0x1e   :  { %153 = vmatpush.msra.mxu0 %v134_v11  ;;  %198 = vmatpush.msra.mxu1 %v134_v11 }
  0x20   :  { %154 = vmatpush.msra.mxu0 %v133_v12  ;;  %199 = vmatpush.msra.mxu1 %v133_v12 }
  0x22   :  { %155 = vmatpush.msra.mxu0 %v132_v13  ;;  %200 = vmatpush.msra.mxu1 %v132_v13 }
  0x24   :  { %156 = vmatpush.msra.mxu0 %v131_v14  ;;  %201 = vmatpush.msra.mxu1 %v131_v14 }
  0x26   :  { %157 = vmatpush.msra.mxu0 %v130_v15  ;;  %202 = vmatpush.msra.mxu1 %v130_v15 }
  0x28   :  { %158 = vmatpush.msra.mxu0 %v129_v16  ;;  %203 = vmatpush.msra.mxu1 %v129_v16 }
  0x2a   :  { %159 = vmatpush.msra.mxu0 %v128_v17  ;;  %204 = vmatpush.msra.mxu1 %v128_v17 }
  0x2c   :  { %160 = vmatpush.msra.mxu0 %v127_v19  ;;  %205 = vmatpush.msra.mxu1 %v127_v19 }
  0x2e   :  { %161 = vmatpush.msra.mxu0 %v126_v21  ;;  %206 = vmatpush.msra.mxu1 %v126_v21 }
  0x82   :  { %v69_v18 = vpop.xlane.xlu0 %68 }
  0x83   :  { %v78_v20 = vmul.f32 0.03125, %v69_v18 }
  0x84   :  { %v75_v22 = vpop.xlane.xlu1 %74 }
  0x85   :  { %v82_v23 = vmul.f32 %v78_v20, %v78_v20  ;;  %v80_v24 = vmul.f32 0.03125, %v75_v22  ;;  %v110_v43 = vsub.f32 %v373_v0, %v78_v20 }
  0x87   :  { %v84_v25 = vsub.f32 %v80_v24, %v82_v23 }
  0x89   :  { %v86_v26 = vmax.f32 %v84_v25, 0.0 }
  0x8a   :  { %v71_v27 = vpop.xlane.xlu0 %70 }
  0x8b   :  { %v88_v28 = vadd.f32 1e-05, %v86_v26  ;;  %v79_v29 = vmul.f32 0.03125, %v71_v27 }
  0x8c   :  { %v77_v30 = vpop.xlane.xlu1 %76 }
  0x8d   :  { %216 = vrsqrt.f32 %v88_v28  ;;  %v83_v31 = vmul.f32 %v79_v29, %v79_v29  ;;  %v81_v32 = vmul.f32 0.03125, %v77_v30  ;;  %vm96_vm1 = vweird.f32 %v88_v28 }
  0x8e   :  { %v111_v55 = vsub.f32 %v378_v2, %v79_v29 }
  0x8f   :  { %v85_v33 = vsub.f32 %v81_v32, %v83_v31 }
  0x91   :  { %v87_v34 = vmax.f32 %v85_v33, 0.0 }
  0x93   :  { %v217_v35 = vpop.eup %216  ;;  %v89_v37 = vadd.f32 1e-05, %v87_v34 }
  0x94   :  { %v91_v36 = vmul.f32 %v217_v35, %v88_v28  ;;  %vm97_vm0 = vweird.f32 %v217_v35 }
  0x95   :  { %218 = vrsqrt.f32 %v89_v37  ;;  %vm98_vm2 = vmor %vm96_vm1, %vm97_vm0  ;;  %vm106_vm4 = vweird.f32 %v89_v37 }
  0x96   :  { %v92_v38 = vmul.f32 %v217_v35, %v91_v36 }
  0x98   :  { %v93_v39 = vmul.f32 0.5, %v92_v38 }
  0x9a   :  { %v94_v40 = vsub.f32 1.5, %v93_v39 }
  0x9b   :  { %v219_v41 = vpop.eup %218 }
  0x9c   :  { %v95_v42 = vmul.f32 %v217_v35, %v94_v40  ;;  %v101_v44 = vmul.f32 %v219_v41, %v89_v37  ;;  %vm107_vm3 = vweird.f32 %v219_v41 }
  0x9d   :  { %vm108_vm5 = vmor %vm106_vm4, %vm107_vm3 }
  0x9e   :  { %v99_v46 = vsel %vm98_vm2, %v217_v35, %v95_v42  ;;  %v102_v47 = vmul.f32 %v219_v41, %v101_v44 }
  0x9f   :  { %v112_v48 = vmul.f32 %v110_v43, %v99_v46 }
  0xa0   :  { %v103_v50 = vmul.f32 0.5, %v102_v47 }
  0xa1   :  { %v118_v51 = vmul.f32 %v213_v45, %v112_v48 }
  0xa2   :  { %v104_v52 = vsub.f32 1.5, %v103_v50 }
  0xa3   :  { %v124_v53 = vadd.f32 %v214_v49, %v118_v51 }
  0xa4   :  { %v105_v54 = vmul.f32 %v219_v41, %v104_v52 }
  0xa5   :  { %162 = vmatmul.f32.vlgmr.msra.gmra.mxu0 %v124_v53 }
  0xa6   :  { %v109_v56 = vsel %vm108_vm5, %v219_v41, %v105_v54 }
  0xa7   :  { %v113_v57 = vmul.f32 %v111_v55, %v109_v56 }
  0xa9   :  { %v119_v58 = vmul.f32 %v213_v45, %v113_v57 }
  0xab   :  { %v125_v59 = vadd.f32 %v214_v49, %v119_v58 }
  0xad   :  { %165 = vmatmul.f32.vlgmr.msra.gmra.mxu1 %v125_v59 }
 0x122   :  { %v163_v61 = vpop.f32.mrf.mxu0 }
 0x123   :  { %v164_v62 = vadd.f32 %v215_v60, %v163_v61 }
 0x125   :  { %169 = vst [vmem:[#allocation8] sm:$0xff] %v164_v62 }
 0x12a   :  { %v166_v63 = vpop.f32.mrf.mxu1 }
 0x12b   :  { %v167_v0 = vadd.f32 %v215_v60, %v166_v63 }
 0x12d   :  { %170 = vst [vmem:[#allocation8 + $0x8] sm:$0xff] %v167_v0 }
 0x12e   :  { %183 = dma.vmem_to_hbm [thread:$0]  %s176_s11, 256, %s178_s14, [#allocation4], %s324_s28, %s324_s28, %s325_s29  }
 0x12f   :  { %320 = dma.done.wait [#allocation4], 256  }
 0x130   :  { %321 = vsyncadd [#allocation4], 4294967040 }
 0x131   :  { %188 = vsyncpa [#allocation3], 1 }
 0x132   :  { %189 = vsyncpa [#allocation6], 1 }
 0x133   :  { %190 = vsyncpa [#allocation4], 1 }

</bundles_post_ra>
